<compile_context>
chip_gen: v5e
topology: v5e:2x2
jax: 0.10.0
libtpu: 0.0.40
codegen_flags: <defaults>
</compile_context>

<pallas_src>
import jax
import jax.numpy as jnp
from jax.experimental import pallas as pl
from jax.experimental.pallas import tpu as pltpu

LANE = 128


# ----------------------------- Pallas kernel ------------------------------ #

def affine_transform_kernel(affine_ref, pts_ref, out_ref):
    """out[c] = A[c,0]*x + A[c,1]*y + A[c,2]*z + A[c,3]   for c in {0,1,2}.

    affine_ref : (12,) f32 in SMEM (row-major 3x4 affine) -- scalar reads
    pts_ref    : (3, R, 128) f32 in VMEM
    out_ref    : (3, R, 128) f32 in VMEM
    """
    # Hoist all 12 SMEM scalar reads once, before the vector work.
    a = [affine_ref[i] for i in range(12)]
    x = pts_ref[0]          # (R, 128) -- full lane/sublane-dense tiles
    y = pts_ref[1]
    z = pts_ref[2]
    # Three full-tile (R, 128) unmasked stores.
    out_ref[0] = a[0] * x + a[1] * y + a[2] * z + a[3]
    out_ref[1] = a[4] * x + a[5] * y + a[6] * z + a[7]
    out_ref[2] = a[8] * x + a[9] * y + a[10] * z + a[11]


def apply_affine_to_points(points, affine, *, max_block_rows=1024):
    """points: (3, N) f32, affine: (3, 4) f32 -> (3, N) f32 = R @ p + t."""
    assert max_block_rows % 8 == 0, "block rows must be a multiple of 8"
    n = points.shape[1]
    points = points.astype(jnp.float32)

    r_total = int(pl.cdiv(n, LANE))          # rows of 128 lanes
    if r_total <= max_block_rows:
        tile_r = r_total                     # whole array in one block
    else:
        tile_r = max_block_rows              # multiple of 8 -> full vregs
        r_total = int(pl.cdiv(r_total, tile_r)) * tile_r
    n_pad = r_total * LANE
    if n_pad != n:                           # not hit for typical grid sizes
        points = jnp.pad(points, ((0, 0), (0, n_pad - n)))
    pts3 = points.reshape(3, r_total, LANE)  # lane-dense last dim

    out = pl.pallas_call(
        affine_transform_kernel,
        out_shape=jax.ShapeDtypeStruct((3, r_total, LANE), jnp.float32),
        grid_spec=pltpu.PrefetchScalarGridSpec(
            num_scalar_prefetch=0,
            grid=(r_total // tile_r,),
            in_specs=[
                pl.BlockSpec(memory_space=pltpu.MemorySpace.SMEM),     # affine
                pl.BlockSpec((3, tile_r, LANE), lambda i: (0, i, 0)),  # points
            ],
            out_specs=pl.BlockSpec((3, tile_r, LANE), lambda i: (0, i, 0)),
        ),
        compiler_params=pltpu.CompilerParams(
            # Independent blocks -> shardable across both v7x TensorCores.
            dimension_semantics=("parallel",)),
    )(affine.astype(jnp.float32).reshape(12), pts3)

    out = out.reshape(3, n_pad)
    return out if n_pad == n else out[:, :n]


# ------------------------------ plain-JAX glue ----------------------------- #

def compute_coordinates(grid_size, center, resolution):
    """Centered voxel-center grid, shape (3, X, Y, Z)."""
    axes = [(jnp.arange(s, dtype=jnp.float32) + 0.5 - s / 2.0) * resolution + c
            for s, c in zip(grid_size, center)]
    gx, gy, gz = jnp.meshgrid(*axes, indexing="ij")
    return jnp.stack([gx, gy, gz], axis=0)


def random_rotation_matrix(key, axis, max_angle=180.0):
    """Quaternion-style rotation about `axis` by a uniform random angle."""
    max_rad = jnp.deg2rad(max_angle)
    theta = jax.random.uniform(key, (), minval=-max_rad, maxval=max_rad)
    half = theta / 2.0
    w = jnp.cos(half)
    xyz = jnp.sin(half) * axis
    x, y, z = xyz[0], xyz[1], xyz[2]
    return jnp.stack([
        jnp.stack([1 - 2 * (y ** 2 + z ** 2), 2 * (x * y - z * w), 2 * (x * z + y * w)]),
        jnp.stack([2 * (x * y + z * w), 1 - 2 * (x ** 2 + z ** 2), 2 * (y * z - x * w)]),
        jnp.stack([2 * (x * z - y * w), 2 * (y * z + x * w), 1 - 2 * (x ** 2 + y ** 2)]),
    ])


def random_translation(key, chunk_extent, grid_extent):
    area = chunk_extent - grid_extent
    return jax.random.uniform(key, (3,), minval=-area / 2.0, maxval=area / 2.0)


def get_transformed_coordinate_grid(coordinates_grid, data, config, key,
                                    training=True):
    """Mirror of SampleCoordinateGrid.get_transformer_coordinate_grid."""
    C, X, Y, Z = coordinates_grid.shape
    pts = coordinates_grid.reshape(3, X * Y * Z)  # flatten (x y z) order

    grid_extent = (jnp.asarray(config["grid_size_sample"], jnp.float32)
                   * config["grid_resolution_sample"])

    if training:
        k_rot, k_trans = jax.random.split(key)
        if config["enable_rotation"]:
            axis = data["cameras"][0]["T_cw"][:3, 2]
            R_random = random_rotation_matrix(k_rot, axis)
        else:
            R_random = jnp.eye(3, dtype=jnp.float32)
        if config["enable_translation"]:
            t_random = random_translation(k_trans, data["chunk_extent"],
                                          grid_extent)
        else:
            t_random = jnp.zeros(3, dtype=jnp.float32)
    else:
        R_random = jnp.eye(3, dtype=jnp.float32)
        t_random = jnp.zeros(3, dtype=jnp.float32)

    T_random = jnp.concatenate([
        jnp.concatenate([R_random, t_random[:, None]], axis=1),
        jnp.array([[0.0, 0.0, 0.0, 1.0]], dtype=jnp.float32),
    ], axis=0)

    # Fold "+ chunk_center" (applied after the matmul in the reference)
    # into the affine translation column fed to the kernel.
    affine = jnp.concatenate(
        [R_random, (t_random + data["chunk_center"])[:, None]], axis=1)

    out_pts = apply_affine_to_points(pts, affine)          # <-- Pallas hot path
    coordinate_grid = out_pts.reshape(3, X, Y, Z)
    return coordinate_grid, T_random


def sample_coordinate_grid_forward(data, config, key, training=True):
    coordinates_grid = compute_coordinates(
        config["grid_size_sample"], jnp.zeros(3, jnp.float32),
        config["grid_resolution_sample"])

    if config.get("grid_resolution_sample_fine") is not None:
        # Distinct key for the fine grid (the numpy reference draws new
        # randoms for each call, so the two transforms are independent).
        key, k_fine = jax.random.split(key)
        fine_grid = compute_coordinates(
            config["grid_size_sample_fine"], jnp.zeros(3, jnp.float32),
            config["grid_resolution_sample_fine"])
        data["coordinates_fine"], _ = get_transformed_coordinate_grid(
            fine_grid, data, config, k_fine, training)

    coordinate_grid, T_random = get_transformed_coordinate_grid(
        coordinates_grid, data, config, key, training)

    data["coordinates"] = coordinate_grid.astype(jnp.float32)
    data.setdefault("verbose", {})
    data["verbose"]["grid_size"] = config["grid_size_sample"]
    data["verbose"]["resolution"] = config["grid_resolution_sample"]
    data["verbose"]["center"] = data["chunk_center"] + T_random[:3, 3]
    data["verbose"]["T_random"] = T_random
    return data


# ----------------------------------- main ---------------------------------- #

if __name__ == "__main__":
    key = jax.random.PRNGKey(0)
    k_data, k_fwd = jax.random.split(key)

    config = {
        "grid_size_sample": [8, 8, 8],
        "grid_resolution_sample": 0.04,
        "grid_resolution_sample_fine": 0.02,     # exercise the fine-grid path
        "grid_size_sample_fine": [16, 16, 16],
        "enable_rotation": True,
        "enable_translation": True,
    }

    # Deterministic synthetic "data" (camera pose, chunk geometry).
    T_cw = jnp.eye(4, dtype=jnp.float32)  # identity camera pose -> axis = z
    chunk_extent = jnp.array([1.0, 1.0, 1.0], dtype=jnp.float32)
    chunk_center = jax.random.normal(k_data, (3,), dtype=jnp.float32) * 0.3

    # Jit the whole forward: for the tiny default grid, dispatch overhead
    # dominates the kernel itself.
    def forward_fn(chunk_center, chunk_extent, T_cw, key):
        data = {"cameras": [{"T_cw": T_cw}],
                "chunk_extent": chunk_extent,
                "chunk_center": chunk_center}
        out = sample_coordinate_grid_forward(data, config, key, training=True)
        return (out["coordinates"], out["coordinates_fine"],
                out["verbose"]["T_random"], out["verbose"]["center"])

    forward_jit = jax.jit(forward_fn)
    coords, coords_fine, T_random, center = jax.block_until_ready(
        forward_jit(chunk_center, chunk_extent, T_cw, k_fwd))

    # --- pure-JAX reference check of the kernel hot path (coarse grid) ---
    base = compute_coordinates(config["grid_size_sample"],
                               jnp.zeros(3, jnp.float32),
                               config["grid_resolution_sample"])
    pts = base.reshape(3, -1)
    ref = (T_random[:3, :3] @ pts + T_random[:3, 3:4]
           + chunk_center[:, None]).reshape(coords.shape)
    assert coords.shape == (3, 8, 8, 8) and coords.dtype == jnp.float32
    assert jnp.allclose(coords, ref, atol=1e-5), "kernel mismatch vs reference"
    assert jnp.allclose(center, chunk_center + T_random[:3, 3], atol=1e-6)
    assert coords_fine.shape == (3, 16, 16, 16)
    assert bool(jnp.all(jnp.isfinite(coords_fine)))

    # --- exercise the multi-block (tiled) path of the kernel explicitly ---
    big_pts = compute_coordinates([32, 32, 32], jnp.zeros(3, jnp.float32),
                                  0.04).reshape(3, -1)                 # (3, 32768)
    affine = jnp.concatenate(
        [T_random[:3, :3], (T_random[:3, 3] + chunk_center)[:, None]], axis=1)
    got = jax.block_until_ready(
        apply_affine_to_points(big_pts, affine, max_block_rows=8))     # grid=(32,)
    ref_big = affine[:, :3] @ big_pts + affine[:, 3:4]
    assert jnp.allclose(got, ref_big, atol=1e-5), "tiled-path mismatch"

    print("KERNEL_OK")
</pallas_src>

<mosaic_0001>
module attributes {stable_mosaic.version = 11 : i64} {
  func.func @affine_transform_kernel(%arg0: i32, %arg1: memref<12xf32, #tpu.memory_space<smem>>, %arg2: memref<3x32x128xf32, #tpu.memory_space<vmem>>, %arg3: memref<3x32x128xf32, #tpu.memory_space<vmem>>) attributes {dimension_semantics = [#tpu.dimension_semantics<parallel>], iteration_bounds = array<i64: 1>, scalar_prefetch = 0 : i64, scratch_operands = 0 : i64, tpu.core_type = #tpu.core_type<tc>, window_params = [{transform_indices = @transform_0, window_bounds = array<i64: 12>}, {transform_indices = @transform_1, window_bounds = array<i64: 3, 32, 128>}, {transform_indices = @transform_2, window_bounds = array<i64: 3, 32, 128>}]} {
    %c0 = arith.constant 0 : index
    %0 = memref.load %arg1[%c0] : memref<12xf32, #tpu.memory_space<smem>>
    %c1 = arith.constant 1 : index
    %1 = memref.load %arg1[%c1] : memref<12xf32, #tpu.memory_space<smem>>
    %c2 = arith.constant 2 : index
    %2 = memref.load %arg1[%c2] : memref<12xf32, #tpu.memory_space<smem>>
    %c3 = arith.constant 3 : index
    %3 = memref.load %arg1[%c3] : memref<12xf32, #tpu.memory_space<smem>>
    %c4 = arith.constant 4 : index
    %4 = memref.load %arg1[%c4] : memref<12xf32, #tpu.memory_space<smem>>
    %c5 = arith.constant 5 : index
    %5 = memref.load %arg1[%c5] : memref<12xf32, #tpu.memory_space<smem>>
    %c6 = arith.constant 6 : index
    %6 = memref.load %arg1[%c6] : memref<12xf32, #tpu.memory_space<smem>>
    %c7 = arith.constant 7 : index
    %7 = memref.load %arg1[%c7] : memref<12xf32, #tpu.memory_space<smem>>
    %c8 = arith.constant 8 : index
    %8 = memref.load %arg1[%c8] : memref<12xf32, #tpu.memory_space<smem>>
    %c9 = arith.constant 9 : index
    %9 = memref.load %arg1[%c9] : memref<12xf32, #tpu.memory_space<smem>>
    %c10 = arith.constant 10 : index
    %10 = memref.load %arg1[%c10] : memref<12xf32, #tpu.memory_space<smem>>
    %c11 = arith.constant 11 : index
    %11 = memref.load %arg1[%c11] : memref<12xf32, #tpu.memory_space<smem>>
    %c0_0 = arith.constant 0 : index
    %c0_1 = arith.constant 0 : index
    %c0_2 = arith.constant 0 : index
    %12 = vector.load %arg2[%c0_0, %c0_1, %c0_2] : memref<3x32x128xf32, #tpu.memory_space<vmem>>, vector<1x32x128xf32>
    %13 = vector.shape_cast %12 : vector<1x32x128xf32> to vector<32x128xf32>
    %c1_3 = arith.constant 1 : index
    %c0_4 = arith.constant 0 : index
    %c0_5 = arith.constant 0 : index
    %14 = vector.load %arg2[%c1_3, %c0_4, %c0_5] : memref<3x32x128xf32, #tpu.memory_space<vmem>>, vector<1x32x128xf32>
    %15 = vector.shape_cast %14 : vector<1x32x128xf32> to vector<32x128xf32>
    %c2_6 = arith.constant 2 : index
    %c0_7 = arith.constant 0 : index
    %c0_8 = arith.constant 0 : index
    %16 = vector.load %arg2[%c2_6, %c0_7, %c0_8] : memref<3x32x128xf32, #tpu.memory_space<vmem>>, vector<1x32x128xf32>
    %17 = vector.shape_cast %16 : vector<1x32x128xf32> to vector<32x128xf32>
    %18 = vector.broadcast %0 : f32 to vector<32x128xf32>
    %19 = arith.mulf %18, %13 : vector<32x128xf32>
    %20 = vector.broadcast %1 : f32 to vector<32x128xf32>
    %21 = arith.mulf %20, %15 : vector<32x128xf32>
    %22 = arith.addf %19, %21 : vector<32x128xf32>
    %23 = vector.broadcast %2 : f32 to vector<32x128xf32>
    %24 = arith.mulf %23, %17 : vector<32x128xf32>
    %25 = arith.addf %22, %24 : vector<32x128xf32>
    %26 = vector.broadcast %3 : f32 to vector<32x128xf32>
    %27 = arith.addf %25, %26 : vector<32x128xf32>
    %c0_9 = arith.constant 0 : index
    %c0_10 = arith.constant 0 : index
    %c0_11 = arith.constant 0 : index
    %28 = vector.load %arg3[%c0_9, %c0_10, %c0_11] : memref<3x32x128xf32, #tpu.memory_space<vmem>>, vector<1x32x128xf32>
    %29 = vector.shape_cast %28 : vector<1x32x128xf32> to vector<32x128xf32>
    %30 = vector.shape_cast %27 : vector<32x128xf32> to vector<1x32x128xf32>
    tpu.vector_store %arg3[%c0_9, %c0_10, %c0_11], %30 {strides = array<i32>} : memref<3x32x128xf32, #tpu.memory_space<vmem>>, vector<1x32x128xf32>,
    %31 = vector.broadcast %4 : f32 to vector<32x128xf32>
    %32 = arith.mulf %31, %13 : vector<32x128xf32>
    %33 = vector.broadcast %5 : f32 to vector<32x128xf32>
    %34 = arith.mulf %33, %15 : vector<32x128xf32>
    %35 = arith.addf %32, %34 : vector<32x128xf32>
    %36 = vector.broadcast %6 : f32 to vector<32x128xf32>
    %37 = arith.mulf %36, %17 : vector<32x128xf32>
    %38 = arith.addf %35, %37 : vector<32x128xf32>
    %39 = vector.broadcast %7 : f32 to vector<32x128xf32>
    %40 = arith.addf %38, %39 : vector<32x128xf32>
    %c1_12 = arith.constant 1 : index
    %c0_13 = arith.constant 0 : index
    %c0_14 = arith.constant 0 : index
    %41 = vector.load %arg3[%c1_12, %c0_13, %c0_14] : memref<3x32x128xf32, #tpu.memory_space<vmem>>, vector<1x32x128xf32>
    %42 = vector.shape_cast %41 : vector<1x32x128xf32> to vector<32x128xf32>
    %43 = vector.shape_cast %40 : vector<32x128xf32> to vector<1x32x128xf32>
    tpu.vector_store %arg3[%c1_12, %c0_13, %c0_14], %43 {strides = array<i32>} : memref<3x32x128xf32, #tpu.memory_space<vmem>>, vector<1x32x128xf32>,
    %44 = vector.broadcast %8 : f32 to vector<32x128xf32>
    %45 = arith.mulf %44, %13 : vector<32x128xf32>
    %46 = vector.broadcast %9 : f32 to vector<32x128xf32>
    %47 = arith.mulf %46, %15 : vector<32x128xf32>
    %48 = arith.addf %45, %47 : vector<32x128xf32>
    %49 = vector.broadcast %10 : f32 to vector<32x128xf32>
    %50 = arith.mulf %49, %17 : vector<32x128xf32>
    %51 = arith.addf %48, %50 : vector<32x128xf32>
    %52 = vector.broadcast %11 : f32 to vector<32x128xf32>
    %53 = arith.addf %51, %52 : vector<32x128xf32>
    %c2_15 = arith.constant 2 : index
    %c0_16 = arith.constant 0 : index
    %c0_17 = arith.constant 0 : index
    %54 = vector.load %arg3[%c2_15, %c0_16, %c0_17] : memref<3x32x128xf32, #tpu.memory_space<vmem>>, vector<1x32x128xf32>
    %55 = vector.shape_cast %54 : vector<1x32x128xf32> to vector<32x128xf32>
    %56 = vector.shape_cast %53 : vector<32x128xf32> to vector<1x32x128xf32>
    tpu.vector_store %arg3[%c2_15, %c0_16, %c0_17], %56 {strides = array<i32>} : memref<3x32x128xf32, #tpu.memory_space<vmem>>, vector<1x32x128xf32>,
    return
  }
  func.func @transform_0(%arg0: i32) -> i32 {
    %c0_i32 = arith.constant 0 : i32
    %c0_i32_0 = arith.constant 0 : i32
    return %c0_i32 : i32
  }
  func.func @transform_1(%arg0: i32) -> (i32, i32, i32) {
    %c0_i32 = arith.constant 0 : i32
    %c0_i32_0 = arith.constant 0 : i32
    %c0_i32_1 = arith.constant 0 : i32
    return %c0_i32, %arg0, %c0_i32_0 : i32, i32, i32
  }
  func.func @transform_2(%arg0: i32) -> (i32, i32, i32) {
    %c0_i32 = arith.constant 0 : i32
    %c0_i32_0 = arith.constant 0 : i32
    %c0_i32_1 = arith.constant 0 : i32
    return %c0_i32, %arg0, %c0_i32_0 : i32, i32, i32
  }
}

module attributes {stable_mosaic.version = 11 : i64} {
  func.func @affine_transform_kernel(%arg0: i32, %arg1: memref<12xf32, #tpu.memory_space<smem>>, %arg2: memref<3x4x128xf32, #tpu.memory_space<vmem>>, %arg3: memref<3x4x128xf32, #tpu.memory_space<vmem>>) attributes {dimension_semantics = [#tpu.dimension_semantics<parallel>], iteration_bounds = array<i64: 1>, scalar_prefetch = 0 : i64, scratch_operands = 0 : i64, tpu.core_type = #tpu.core_type<tc>, window_params = [{transform_indices = @transform_0, window_bounds = array<i64: 12>}, {transform_indices = @transform_1, window_bounds = array<i64: 3, 4, 128>}, {transform_indices = @transform_2, window_bounds = array<i64: 3, 4, 128>}]} {
    %c0 = arith.constant 0 : index
    %0 = memref.load %arg1[%c0] : memref<12xf32, #tpu.memory_space<smem>>
    %c1 = arith.constant 1 : index
    %1 = memref.load %arg1[%c1] : memref<12xf32, #tpu.memory_space<smem>>
    %c2 = arith.constant 2 : index
    %2 = memref.load %arg1[%c2] : memref<12xf32, #tpu.memory_space<smem>>
    %c3 = arith.constant 3 : index
    %3 = memref.load %arg1[%c3] : memref<12xf32, #tpu.memory_space<smem>>
    %c4 = arith.constant 4 : index
    %4 = memref.load %arg1[%c4] : memref<12xf32, #tpu.memory_space<smem>>
    %c5 = arith.constant 5 : index
    %5 = memref.load %arg1[%c5] : memref<12xf32, #tpu.memory_space<smem>>
    %c6 = arith.constant 6 : index
    %6 = memref.load %arg1[%c6] : memref<12xf32, #tpu.memory_space<smem>>
    %c7 = arith.constant 7 : index
    %7 = memref.load %arg1[%c7] : memref<12xf32, #tpu.memory_space<smem>>
    %c8 = arith.constant 8 : index
    %8 = memref.load %arg1[%c8] : memref<12xf32, #tpu.memory_space<smem>>
    %c9 = arith.constant 9 : index
    %9 = memref.load %arg1[%c9] : memref<12xf32, #tpu.memory_space<smem>>
    %c10 = arith.constant 10 : index
    %10 = memref.load %arg1[%c10] : memref<12xf32, #tpu.memory_space<smem>>
    %c11 = arith.constant 11 : index
    %11 = memref.load %arg1[%c11] : memref<12xf32, #tpu.memory_space<smem>>
    %c0_0 = arith.constant 0 : index
    %c0_1 = arith.constant 0 : index
    %c0_2 = arith.constant 0 : index
    %12 = vector.load %arg2[%c0_0, %c0_1, %c0_2] : memref<3x4x128xf32, #tpu.memory_space<vmem>>, vector<1x4x128xf32>
    %13 = vector.shape_cast %12 : vector<1x4x128xf32> to vector<4x128xf32>
    %c1_3 = arith.constant 1 : index
    %c0_4 = arith.constant 0 : index
    %c0_5 = arith.constant 0 : index
    %14 = vector.load %arg2[%c1_3, %c0_4, %c0_5] : memref<3x4x128xf32, #tpu.memory_space<vmem>>, vector<1x4x128xf32>
    %15 = vector.shape_cast %14 : vector<1x4x128xf32> to vector<4x128xf32>
    %c2_6 = arith.constant 2 : index
    %c0_7 = arith.constant 0 : index
    %c0_8 = arith.constant 0 : index
    %16 = vector.load %arg2[%c2_6, %c0_7, %c0_8] : memref<3x4x128xf32, #tpu.memory_space<vmem>>, vector<1x4x128xf32>
    %17 = vector.shape_cast %16 : vector<1x4x128xf32> to vector<4x128xf32>
    %18 = vector.broadcast %0 : f32 to vector<4x128xf32>
    %19 = arith.mulf %18, %13 : vector<4x128xf32>
    %20 = vector.broadcast %1 : f32 to vector<4x128xf32>
    %21 = arith.mulf %20, %15 : vector<4x128xf32>
    %22 = arith.addf %19, %21 : vector<4x128xf32>
    %23 = vector.broadcast %2 : f32 to vector<4x128xf32>
    %24 = arith.mulf %23, %17 : vector<4x128xf32>
    %25 = arith.addf %22, %24 : vector<4x128xf32>
    %26 = vector.broadcast %3 : f32 to vector<4x128xf32>
    %27 = arith.addf %25, %26 : vector<4x128xf32>
    %c0_9 = arith.constant 0 : index
    %c0_10 = arith.constant 0 : index
    %c0_11 = arith.constant 0 : index
    %28 = vector.load %arg3[%c0_9, %c0_10, %c0_11] : memref<3x4x128xf32, #tpu.memory_space<vmem>>, vector<1x4x128xf32>
    %29 = vector.shape_cast %28 : vector<1x4x128xf32> to vector<4x128xf32>
    %30 = vector.shape_cast %27 : vector<4x128xf32> to vector<1x4x128xf32>
    tpu.vector_store %arg3[%c0_9, %c0_10, %c0_11], %30 {strides = array<i32>} : memref<3x4x128xf32, #tpu.memory_space<vmem>>, vector<1x4x128xf32>,
    %31 = vector.broadcast %4 : f32 to vector<4x128xf32>
    %32 = arith.mulf %31, %13 : vector<4x128xf32>
    %33 = vector.broadcast %5 : f32 to vector<4x128xf32>
    %34 = arith.mulf %33, %15 : vector<4x128xf32>
    %35 = arith.addf %32, %34 : vector<4x128xf32>
    %36 = vector.broadcast %6 : f32 to vector<4x128xf32>
    %37 = arith.mulf %36, %17 : vector<4x128xf32>
    %38 = arith.addf %35, %37 : vector<4x128xf32>
    %39 = vector.broadcast %7 : f32 to vector<4x128xf32>
    %40 = arith.addf %38, %39 : vector<4x128xf32>
    %c1_12 = arith.constant 1 : index
    %c0_13 = arith.constant 0 : index
    %c0_14 = arith.constant 0 : index
    %41 = vector.load %arg3[%c1_12, %c0_13, %c0_14] : memref<3x4x128xf32, #tpu.memory_space<vmem>>, vector<1x4x128xf32>
    %42 = vector.shape_cast %41 : vector<1x4x128xf32> to vector<4x128xf32>
    %43 = vector.shape_cast %40 : vector<4x128xf32> to vector<1x4x128xf32>
    tpu.vector_store %arg3[%c1_12, %c0_13, %c0_14], %43 {strides = array<i32>} : memref<3x4x128xf32, #tpu.memory_space<vmem>>, vector<1x4x128xf32>,
    %44 = vector.broadcast %8 : f32 to vector<4x128xf32>
    %45 = arith.mulf %44, %13 : vector<4x128xf32>
    %46 = vector.broadcast %9 : f32 to vector<4x128xf32>
    %47 = arith.mulf %46, %15 : vector<4x128xf32>
    %48 = arith.addf %45, %47 : vector<4x128xf32>
    %49 = vector.broadcast %10 : f32 to vector<4x128xf32>
    %50 = arith.mulf %49, %17 : vector<4x128xf32>
    %51 = arith.addf %48, %50 : vector<4x128xf32>
    %52 = vector.broadcast %11 : f32 to vector<4x128xf32>
    %53 = arith.addf %51, %52 : vector<4x128xf32>
    %c2_15 = arith.constant 2 : index
    %c0_16 = arith.constant 0 : index
    %c0_17 = arith.constant 0 : index
    %54 = vector.load %arg3[%c2_15, %c0_16, %c0_17] : memref<3x4x128xf32, #tpu.memory_space<vmem>>, vector<1x4x128xf32>
    %55 = vector.shape_cast %54 : vector<1x4x128xf32> to vector<4x128xf32>
    %56 = vector.shape_cast %53 : vector<4x128xf32> to vector<1x4x128xf32>
    tpu.vector_store %arg3[%c2_15, %c0_16, %c0_17], %56 {strides = array<i32>} : memref<3x4x128xf32, #tpu.memory_space<vmem>>, vector<1x4x128xf32>,
    return
  }
  func.func @transform_0(%arg0: i32) -> i32 {
    %c0_i32 = arith.constant 0 : i32
    %c0_i32_0 = arith.constant 0 : i32
    return %c0_i32 : i32
  }
  func.func @transform_1(%arg0: i32) -> (i32, i32, i32) {
    %c0_i32 = arith.constant 0 : i32
    %c0_i32_0 = arith.constant 0 : i32
    %c0_i32_1 = arith.constant 0 : i32
    return %c0_i32, %arg0, %c0_i32_0 : i32, i32, i32
  }
  func.func @transform_2(%arg0: i32) -> (i32, i32, i32) {
    %c0_i32 = arith.constant 0 : i32
    %c0_i32_0 = arith.constant 0 : i32
    %c0_i32_1 = arith.constant 0 : i32
    return %c0_i32, %arg0, %c0_i32_0 : i32, i32, i32
  }
}

</mosaic_0001>

<bundles_post_ra>
// kernel: forward_fn.2
= control target key start
LH: loop header
LB: loop body
LE: loop exit
PB: predicated region body
PF: predicated region fallthrough
CT: control target
= control target key end

     0   :  { %7 = vsyncpa [#allocation3], 0  ;;  %s111_s12 = smov [#allocation2]   ;;  %s148_s0 = inlined_call_operand.vmem [shape: f32[12], index: 0, kind: input, shape index: {}]   ;;  %s149_s1 = inlined_call_operand.vmem [shape: f32[3,4,128], index: 1, kind: input, shape index: {}]   ;;  %s150_s2 = inlined_call_operand.vmem [shape: f32[3,4,128], index: 2, kind: output, shape index: {}]  }
   0x1   :  { %s13_s11 = sshll.u32 %s148_s0, 4  ;;  %s14_s11 = int_to_ptr.vmem [resolvable:$true] %s13_s11 }
   0x2   :  { %16 = dma.vmem_to_smem %s14_s11, 16, %s111_s12, [#allocation3]  }
   0x3   :  { %109 = dma.done.wait [#allocation3], 16  }
   0x4   :  { %110 = vsyncadd [#allocation3], 4294967280 }
   0x5   :  { %23 = sfence }
   0x6   :  { %s24_s13 = sld [smem:[#allocation2]]  ;;  %v36_v0 = vld [vmem:[%s149_s1] sm:$0xf]  ;;  %v92_v1 = vld [vmem:[%s149_s1 + $0x4] sm:$0xf] }
   0x7   :  { %s81_s14 = sld [smem:[#allocation2 + $0x1]]  ;;  %v93_v2 = vld [vmem:[%s149_s1 + $0x8] sm:$0xf] }
   0x8   :  { %s82_s15 = sld [smem:[#allocation2 + $0x2]] }
   0x9   :  { %s83_s16 = sld [smem:[#allocation2 + $0x3]] }
   0xa   :  { %s84_s19 = sld [smem:[#allocation2 + $0x4]] }
   0xb   :  { %s85_s0 = sld [smem:[#allocation2 + $0x5]] }
   0xc   :  { %v41_v3 = vstv %s24_s13  ;;  %s86_s24 = sld [smem:[#allocation2 + $0x6]] }
   0xd   :  { %v42_v4 = vmul.f32 %v41_v3, %v36_v0  ;;  %v43_v5 = vstv %s81_s14  ;;  %s87_s25 = sld [smem:[#allocation2 + $0x7]] }
   0xe   :  { %v44_v6 = vmul.f32 %v92_v1, %v43_v5  ;;  %v46_v7 = vstv %s82_s15  ;;  %s88_s26 = sld [smem:[#allocation2 + $0x8]] }
   0xf   :  { %v47_v8 = vmul.f32 %v93_v2, %v46_v7  ;;  %s89_s27 = sld [smem:[#allocation2 + $0x9]]  ;;  %v49_v11 = vstv %s83_s16 }
  0x10   :  { %v45_v9 = vadd.f32 %v44_v6, %v42_v4  ;;  %v52_v10 = vstv %s84_s19  ;;  %s90_s28 = sld [smem:[#allocation2 + $0xa]] }
  0x11   :  { %v53_v12 = vmul.f32 %v52_v10, %v36_v0  ;;  %v54_v13 = vstv %s85_s0  ;;  %s91_s29 = sld [smem:[#allocation2 + $0xb]] }
  0x12   :  { %v48_v14 = vadd.f32 %v47_v8, %v45_v9  ;;  %v55_v15 = vmul.f32 %v92_v1, %v54_v13  ;;  %v57_v16 = vstv %s86_s24 }
  0x13   :  { %v58_v17 = vmul.f32 %v93_v2, %v57_v16  ;;  %v60_v21 = vstv %s87_s25 }
  0x14   :  { %v50_v18 = vadd.f32 %v49_v11, %v48_v14  ;;  %v56_v19 = vadd.f32 %v55_v15, %v53_v12  ;;  %v64_v20 = vstv %s88_s26 }
  0x15   :  { %v65_v22 = vmul.f32 %v64_v20, %v36_v0  ;;  %v66_v23 = vstv %s89_s27 }
  0x16   :  { %51 = vst [vmem:[%s150_s2] sm:$0xf] %v50_v18  ;;  %v59_v24 = vadd.f32 %v58_v17, %v56_v19  ;;  %v67_v25 = vmul.f32 %v92_v1, %v66_v23  ;;  %v69_v26 = vstv %s90_s28 }
  0x17   :  { %v70_v27 = vmul.f32 %v93_v2, %v69_v26  ;;  %v72_v30 = vstv %s91_s29 }
  0x18   :  { %v61_v28 = vadd.f32 %v60_v21, %v59_v24  ;;  %v68_v29 = vadd.f32 %v67_v25, %v65_v22 }
  0x1a   :  { %94 = vst [vmem:[%s150_s2 + $0x4] sm:$0xf] %v61_v28  ;;  %v71_v31 = vadd.f32 %v70_v27, %v68_v29 }
  0x1c   :  { %v73_v32 = vadd.f32 %v72_v30, %v71_v31 }
  0x1e   :  { %95 = vst [vmem:[%s150_s2 + $0x8] sm:$0xf] %v73_v32 }
  0x1f   :  { %80 = vsyncpa [#allocation3], 1 }

// kernel: forward_fn.3
= control target key start
LH: loop header
LB: loop body
LE: loop exit
PB: predicated region body
PF: predicated region fallthrough
CT: control target
= control target key end

     0   :  { %7 = vsyncpa [#allocation3], 0  ;;  %s195_s12 = smov [#allocation2]   ;;  %s367_s0 = inlined_call_operand.vmem [shape: f32[12], index: 0, kind: input, shape index: {}]   ;;  %s368_s1 = inlined_call_operand.vmem [shape: f32[3,32,128], index: 1, kind: input, shape index: {}]   ;;  %s369_s2 = inlined_call_operand.vmem [shape: f32[3,32,128], index: 2, kind: output, shape index: {}]  }
   0x1   :  { %s13_s11 = sshll.u32 %s367_s0, 4  ;;  %s14_s11 = int_to_ptr.vmem [resolvable:$true] %s13_s11 }
   0x2   :  { %16 = dma.vmem_to_smem %s14_s11, 16, %s195_s12, [#allocation3]  }
   0x3   :  { %193 = dma.done.wait [#allocation3], 16  }
   0x4   :  { %194 = vsyncadd [#allocation3], 4294967280 }
   0x5   :  { %23 = sfence }
   0x6   :  { %s24_s13 = sld [smem:[#allocation2]]  ;;  %v217_v0 = vld [vmem:[%s368_s1] sm:$0xff]  ;;  %v222_v1 = vld [vmem:[%s368_s1 + $0x8] sm:$0xff]  ;;  %v227_v2 = vld [vmem:[%s368_s1 + $0x10] sm:$0xff] }
   0x7   :  { %s153_s14 = sld [smem:[#allocation2 + $0x1]]  ;;  %v234_v3 = vld [vmem:[%s368_s1 + $0x20] sm:$0xff]  ;;  %v239_v4 = vld [vmem:[%s368_s1 + $0x28] sm:$0xff]  ;;  %v244_v5 = vld [vmem:[%s368_s1 + $0x30] sm:$0xff] }
   0x8   :  { %s154_s15 = sld [smem:[#allocation2 + $0x2]]  ;;  %v251_v6 = vld [vmem:[%s368_s1 + $0x40] sm:$0xff]  ;;  %v256_v8 = vld [vmem:[%s368_s1 + $0x48] sm:$0xff]  ;;  %v261_v9 = vld [vmem:[%s368_s1 + $0x50] sm:$0xff] }
   0x9   :  { %s155_s16 = sld [smem:[#allocation2 + $0x3]]  ;;  %v271_v14 = vld [vmem:[%s368_s1 + $0x18] sm:$0xff] }
   0xa   :  { %s229_s22 = sld [smem:[#allocation2 + $0x4]]  ;;  %v279_v19 = vld [vmem:[%s368_s1 + $0x38] sm:$0xff] }
   0xb   :  { %s246_s29 = sld [smem:[#allocation2 + $0x5]]  ;;  %v284_v20 = vld [vmem:[%s368_s1 + $0x58] sm:$0xff] }
   0xc   :  { %v50_v7 = vstv %s24_s13  ;;  %s263_s8 = sld [smem:[#allocation2 + $0x6]] }
   0xd   :  { %v51_v10 = vmul.f32 %v50_v7, %v217_v0  ;;  %v55_v11 = vstv %s153_s14  ;;  %v52_v12 = vmul.f32 %v50_v7, %v222_v1  ;;  %v53_v13 = vmul.f32 %v50_v7, %v227_v2  ;;  %s159_s11 = sld [smem:[#allocation2 + $0x7]] }
   0xe   :  { %v56_v15 = vmul.f32 %v234_v3, %v55_v11  ;;  %v64_v16 = vstv %s154_s15  ;;  %v57_v17 = vmul.f32 %v239_v4, %v55_v11  ;;  %v58_v18 = vmul.f32 %v244_v5, %v55_v11  ;;  %s290_s15 = sld [smem:[#allocation2 + $0x8]] }
   0xf   :  { %v65_v21 = vmul.f32 %v251_v6, %v64_v16  ;;  %v73_v22 = vstv %s155_s16  ;;  %v66_v23 = vmul.f32 %v256_v8, %v64_v16  ;;  %v67_v24 = vmul.f32 %v261_v9, %v64_v16  ;;  %s296_s1 = sld [smem:[#allocation2 + $0x9]] }
  0x10   :  { %v60_v25 = vadd.f32 %v56_v15, %v51_v10  ;;  %v61_v26 = vadd.f32 %v57_v17, %v52_v12  ;;  %v62_v27 = vadd.f32 %v58_v18, %v53_v13  ;;  %v54_v28 = vmul.f32 %v50_v7, %v271_v14  ;;  %s299_s16 = sld [smem:[#allocation2 + $0xa]] }
  0x11   :  { %v59_v29 = vmul.f32 %v279_v19, %v55_v11  ;;  %v68_v30 = vmul.f32 %v284_v20, %v64_v16  ;;  %v82_v31 = vstv %s229_s22  ;;  %v87_v32 = vstv %s246_s29  ;;  %s303_s18 = sld [smem:[#allocation2 + $0xb]] }
  0x12   :  { %v69_v33 = vadd.f32 %v65_v21, %v60_v25  ;;  %v70_v34 = vadd.f32 %v66_v23, %v61_v26  ;;  %v71_v35 = vadd.f32 %v67_v24, %v62_v27  ;;  %v83_v36 = vmul.f32 %v82_v31, %v217_v0 }
  0x13   :  { %v63_v37 = vadd.f32 %v59_v29, %v54_v28  ;;  %v88_v38 = vmul.f32 %v234_v3, %v87_v32  ;;  %v96_v39 = vstv %s263_s8  ;;  %v105_v40 = vstv %s159_s11 }
  0x14   :  { %v74_v41 = vadd.f32 %v73_v22, %v69_v33  ;;  %v75_v42 = vadd.f32 %v73_v22, %v70_v34  ;;  %v76_v43 = vadd.f32 %v73_v22, %v71_v35  ;;  %v97_v44 = vmul.f32 %v251_v6, %v96_v39 }
  0x15   :  { %v72_v45 = vadd.f32 %v68_v30, %v63_v37  ;;  %v92_v46 = vadd.f32 %v88_v38, %v83_v36  ;;  %v84_v47 = vmul.f32 %v82_v31, %v222_v1  ;;  %v89_v48 = vmul.f32 %v239_v4, %v87_v32 }
  0x16   :  { %78 = vst [vmem:[%s369_s2] sm:$0xff] %v74_v41  ;;  %v98_v49 = vmul.f32 %v256_v8, %v96_v39  ;;  %v85_v50 = vmul.f32 %v82_v31, %v227_v2  ;;  %v90_v51 = vmul.f32 %v244_v5, %v87_v32  ;;  %v99_v52 = vmul.f32 %v261_v9, %v96_v39 }
  0x17   :  { %79 = vst [vmem:[%s369_s2 + $0x8] sm:$0xff] %v75_v42  ;;  %v77_v53 = vadd.f32 %v73_v22, %v72_v45  ;;  %v101_v54 = vadd.f32 %v97_v44, %v92_v46  ;;  %v93_v55 = vadd.f32 %v89_v48, %v84_v47  ;;  %v86_v56 = vmul.f32 %v82_v31, %v271_v14 }
  0x18   :  { %80 = vst [vmem:[%s369_s2 + $0x10] sm:$0xff] %v76_v43  ;;  %v94_v57 = vadd.f32 %v90_v51, %v85_v50  ;;  %v91_v58 = vmul.f32 %v279_v19, %v87_v32  ;;  %v100_v59 = vmul.f32 %v284_v20, %v96_v39  ;;  %v115_v60 = vstv %s290_s15 }
  0x19   :  { %81 = vst [vmem:[%s369_s2 + $0x18] sm:$0xff] %v77_v53  ;;  %v106_v61 = vadd.f32 %v105_v40, %v101_v54  ;;  %v102_v62 = vadd.f32 %v98_v49, %v93_v55  ;;  %v116_v63 = vmul.f32 %v115_v60, %v217_v0  ;;  %v120_v7 = vstv %s296_s1 }
  0x1a   :  { %v103_v10 = vadd.f32 %v99_v52, %v94_v57  ;;  %v95_v11 = vadd.f32 %v91_v58, %v86_v56  ;;  %v121_v12 = vmul.f32 %v234_v3, %v120_v7  ;;  %v129_v13 = vstv %s299_s16 }
  0x1b   :  { %172 = vst [vmem:[%s369_s2 + $0x20] sm:$0xff] %v106_v61  ;;  %v107_v15 = vadd.f32 %v105_v40, %v102_v62  ;;  %v130_v16 = vmul.f32 %v251_v6, %v129_v13  ;;  %v138_v17 = vstv %s303_s18  ;;  %v117_v18 = vmul.f32 %v115_v60, %v222_v1 }
  0x1c   :  { %v108_v21 = vadd.f32 %v105_v40, %v103_v10  ;;  %v104_v22 = vadd.f32 %v100_v59, %v95_v11  ;;  %v125_v23 = vadd.f32 %v121_v12, %v116_v63  ;;  %v122_v0 = vmul.f32 %v239_v4, %v120_v7 }
  0x1d   :  { %173 = vst [vmem:[%s369_s2 + $0x28] sm:$0xff] %v107_v15  ;;  %v131_v3 = vmul.f32 %v256_v8, %v129_v13  ;;  %v118_v24 = vmul.f32 %v115_v60, %v227_v2  ;;  %v123_v25 = vmul.f32 %v244_v5, %v120_v7  ;;  %v132_v6 = vmul.f32 %v261_v9, %v129_v13 }
  0x1e   :  { %174 = vst [vmem:[%s369_s2 + $0x30] sm:$0xff] %v108_v21  ;;  %v109_v1 = vadd.f32 %v105_v40, %v104_v22  ;;  %v134_v26 = vadd.f32 %v130_v16, %v125_v23  ;;  %v126_v27 = vadd.f32 %v122_v0, %v117_v18  ;;  %v119_v4 = vmul.f32 %v115_v60, %v271_v14 }
  0x1f   :  { %v127_v28 = vadd.f32 %v123_v25, %v118_v24  ;;  %v124_v29 = vmul.f32 %v279_v19, %v120_v7  ;;  %v133_v8 = vmul.f32 %v284_v20, %v129_v13 }
  0x20   :  { %175 = vst [vmem:[%s369_s2 + $0x38] sm:$0xff] %v109_v1  ;;  %v139_v2 = vadd.f32 %v138_v17, %v134_v26  ;;  %v135_v5 = vadd.f32 %v131_v3, %v126_v27 }
  0x21   :  { %v136_v9 = vadd.f32 %v132_v6, %v127_v28  ;;  %v128_v30 = vadd.f32 %v124_v29, %v119_v4 }
  0x22   :  { %176 = vst [vmem:[%s369_s2 + $0x40] sm:$0xff] %v139_v2  ;;  %v140_v31 = vadd.f32 %v138_v17, %v135_v5 }
  0x23   :  { %v141_v32 = vadd.f32 %v138_v17, %v136_v9  ;;  %v137_v14 = vadd.f32 %v133_v8, %v128_v30 }
  0x24   :  { %177 = vst [vmem:[%s369_s2 + $0x48] sm:$0xff] %v140_v31 }
  0x25   :  { %178 = vst [vmem:[%s369_s2 + $0x50] sm:$0xff] %v141_v32  ;;  %v142_v19 = vadd.f32 %v138_v17, %v137_v14 }
  0x27   :  { %179 = vst [vmem:[%s369_s2 + $0x58] sm:$0xff] %v142_v19 }
  0x28   :  { %152 = vsyncpa [#allocation3], 1 }

</bundles_post_ra>
